<compile_context>
chip_gen: v6e
topology: v6e:2x2x1
jax: 0.10.0
libtpu: 0.0.40
codegen_flags: <defaults>
</compile_context>

<pallas_src>
import jax
import jax.numpy as jnp
from jax.experimental import pallas as pl
from jax.experimental.pallas import tpu as pltpu

EPS = 1e-5
LANES = 128                                        # padded feature / hidden width

# Module hyper-params (synthetic, deterministic)
NUMERIC_FEATURES = ["trip_dist", "duration", "hour", "dow", "pax", "tolls"]  # 6
EMB_IN_CHANNELS = [10, 7, 5]
EMB_OUT_CHANNELS = [4, 3, 3]
HIDDEN_LAYERS = [32, 16]
BATCH = 8


# --------------------------------------------------------------------------- #
# Kernel
# --------------------------------------------------------------------------- #
def fare_kernel(x_ref, cat_ref, w_ref, v_ref, out_ref):
    """x_ref:(B,128) numeric in cols 0:6, cat_ref:(B,3) global one-hot columns,
    w_ref:(384,128) = [W1|W2|W3], v_ref:(8,128) = [b1,g1,be1,b2,g2,be2,b3,-]."""
    x = x_ref[...]                                          # (B, 128) f32
    cat = cat_ref[...]                                      # (B, 3) i32
    B, F = x.shape

    # Concatenated one-hot of the 3 categorical features in one shot:
    # indices were pre-offset to disjoint column ranges, so a single iota and
    # three compares (VPU, one vreg) build the whole (B,128) mask.
    lane = jax.lax.broadcasted_iota(jnp.int32, (B, F), 1)
    hit = (lane == cat[:, 0:1]) | (lane == cat[:, 1:2]) | (lane == cat[:, 2:3])
    x = x + hit.astype(jnp.float32)                         # [numeric | onehot | 0]

    v = v_ref[...]                                          # (8, 128)

    def bn_relu(h, gamma, beta):
        # Training-mode batch stats, one-pass variance (biased), eps=1e-5.
        mean = jnp.mean(h, axis=0, keepdims=True)
        var = jnp.mean(h * h, axis=0, keepdims=True) - mean * mean
        hn = (h - mean) * jax.lax.rsqrt(var + EPS)
        return jnp.maximum(hn * gamma + beta, 0.0)

    # Layer 1 (embeddings + concat already folded into W1) -> BN -> ReLU
    h = jnp.dot(x, w_ref[0:LANES, :],
                preferred_element_type=jnp.float32) + v[0:1, :]
    h = bn_relu(h, v[1:2, :], v[2:3, :])

    # Layer 2 -> BN -> ReLU
    h = jnp.dot(h, w_ref[LANES:2 * LANES, :],
                preferred_element_type=jnp.float32) + v[3:4, :]
    h = bn_relu(h, v[4:5, :], v[5:6, :])

    # Final Linear (real result in lane 0, padded lanes are exactly 0).
    out_ref[...] = (jnp.dot(h, w_ref[2 * LANES:3 * LANES, :],
                            preferred_element_type=jnp.float32) + v[6:7, :])


# --------------------------------------------------------------------------- #
# Host-side packing of parameters into two lane-dense slabs
# --------------------------------------------------------------------------- #
def pack_params(params):
    n_num = len(NUMERIC_FEATURES)
    d1, d2 = HIDDEN_LAYERS
    w1, w2, w3 = params["w1"], params["w2"], params["w3"]

    # Combined first-layer weight acting on [numeric | onehot0 | onehot1 | onehot2].
    W1 = jnp.zeros((LANES, LANES), jnp.float32).at[:n_num, :d1].set(w1[:n_num])
    col_offsets = []
    x_off, w_off = n_num, n_num
    for j, (vin, vout) in enumerate(zip(EMB_IN_CHANNELS, EMB_OUT_CHANNELS)):
        folded = jnp.dot(params[f"emb{j}"], w1[w_off:w_off + vout],
                         precision=jax.lax.Precision.HIGHEST)        # (vin, d1)
        W1 = W1.at[x_off:x_off + vin, :d1].set(folded)
        col_offsets.append(x_off)
        x_off += vin
        w_off += vout

    W2 = jnp.zeros((LANES, LANES), jnp.float32).at[:d1, :d2].set(w2)
    W3 = jnp.zeros((LANES, LANES), jnp.float32).at[:d2, :1].set(w3)
    w_slab = jnp.concatenate([W1, W2, W3], axis=0)                   # (384, 128)

    v_slab = jnp.zeros((8, LANES), jnp.float32)
    v_slab = v_slab.at[0, :d1].set(params["b1"][0])
    v_slab = v_slab.at[1, :d1].set(params["g1"][0])
    v_slab = v_slab.at[2, :d1].set(params["be1"][0])
    v_slab = v_slab.at[3, :d2].set(params["b2"][0])
    v_slab = v_slab.at[4, :d2].set(params["g2"][0])
    v_slab = v_slab.at[5, :d2].set(params["be2"][0])
    v_slab = v_slab.at[6, :1].set(params["b3"][0])
    return w_slab, v_slab, jnp.asarray(col_offsets, jnp.int32)


def fare_predictor(numeric, cat, w_slab, v_slab, col_offsets):
    B = numeric.shape[0]
    # Lane-dense input: numeric in cols 0:6, zeros elsewhere; one-hot is added
    # in-kernel.  Categorical indices pre-offset to their global column.
    x_pad = jnp.zeros((B, LANES), jnp.float32).at[:, :numeric.shape[1]].set(
        numeric.astype(jnp.float32))
    cat_g = cat.astype(jnp.int32) + col_offsets[None, :]              # (B, 3)

    vmem = pl.BlockSpec(memory_space=pltpu.MemorySpace.VMEM)
    out = pl.pallas_call(
        fare_kernel,
        out_shape=jax.ShapeDtypeStruct((B, LANES), jnp.float32),      # lane-dense
        in_specs=[vmem, vmem, vmem, vmem],
        out_specs=vmem,
    )(x_pad, cat_g, w_slab, v_slab)
    return out[:, :1]                                                 # (B, 1)


# --------------------------------------------------------------------------- #
# Pure-JAX reference mirroring the PyTorch forward (training-mode BN)
# --------------------------------------------------------------------------- #
def ref_forward(numeric, cat, params):
    embs = [params[f"emb{j}"][cat[:, j]] for j in range(len(EMB_IN_CHANNELS))]
    x = jnp.concatenate([numeric.astype(jnp.float32)] + embs, axis=1)

    def dbr(h_in, w, b, g, be):
        h = h_in @ w + b
        mean = jnp.mean(h, axis=0, keepdims=True)
        var = jnp.mean((h - mean) ** 2, axis=0, keepdims=True)
        return jnp.maximum((h - mean) / jnp.sqrt(var + EPS) * g + be, 0.0)

    h1 = dbr(x, params["w1"], params["b1"], params["g1"], params["be1"])
    h2 = dbr(h1, params["w2"], params["b2"], params["g2"], params["be2"])
    return h2 @ params["w3"] + params["b3"]


def init_params(key):
    n_num = len(NUMERIC_FEATURES)
    feat_dim = n_num + sum(EMB_OUT_CHANNELS)
    keys = jax.random.split(key, 8)
    params = {}
    for j, (vin, vout) in enumerate(zip(EMB_IN_CHANNELS, EMB_OUT_CHANNELS)):
        params[f"emb{j}"] = jax.random.normal(keys[j], (vin, vout), jnp.float32)
    d_in = feat_dim
    for li, d_out in enumerate(HIDDEN_LAYERS, start=1):
        params[f"w{li}"] = jax.random.normal(keys[2 + li], (d_in, d_out),
                                             jnp.float32) * (1.0 / jnp.sqrt(d_in))
        params[f"b{li}"] = jnp.zeros((1, d_out), jnp.float32)
        params[f"g{li}"] = jnp.ones((1, d_out), jnp.float32)
        params[f"be{li}"] = jnp.zeros((1, d_out), jnp.float32)
        d_in = d_out
    params["w3"] = jax.random.normal(keys[7], (d_in, 1), jnp.float32) * (1.0 / jnp.sqrt(d_in))
    params["b3"] = jnp.zeros((1, 1), jnp.float32)
    return params


if __name__ == "__main__":
    key = jax.random.PRNGKey(0)
    k_num, k_cat, k_par = jax.random.split(key, 3)

    numeric = jax.random.normal(k_num, (BATCH, len(NUMERIC_FEATURES)), jnp.float32)
    cat_cols = []
    for j, vin in enumerate(EMB_IN_CHANNELS):
        cat_cols.append(jax.random.randint(jax.random.fold_in(k_cat, j),
                                           (BATCH, 1), 0, vin, jnp.int32))
    cat = jnp.concatenate(cat_cols, axis=1)               # (B, 3) int32

    params = init_params(k_par)
    w_slab, v_slab, col_offsets = pack_params(params)

    out = fare_predictor(numeric, cat, w_slab, v_slab, col_offsets)
    out = jax.block_until_ready(out)

    ref = ref_forward(numeric, cat, params)
    assert out.shape == (BATCH, 1), out.shape
    assert jnp.allclose(out, ref, atol=1e-3, rtol=1e-3), (out, ref)
    print("KERNEL_OK")
</pallas_src>

<mosaic_0001>
module attributes {stable_mosaic.version = 11 : i64} {
  func.func @fare_kernel(%arg0: memref<8x128xf32, #tpu.memory_space<vmem>>, %arg1: memref<8x3xi32, #tpu.memory_space<vmem>>, %arg2: memref<384x128xf32, #tpu.memory_space<vmem>>, %arg3: memref<8x128xf32, #tpu.memory_space<vmem>>, %arg4: memref<8x128xf32, #tpu.memory_space<vmem>>) attributes {dimension_semantics = [], scalar_prefetch = 0 : i64, scratch_operands = 0 : i64, tpu.core_type = #tpu.core_type<tc>} {
    %c0 = arith.constant 0 : index
    %c0_0 = arith.constant 0 : index
    %0 = vector.load %arg0[%c0, %c0_0] : memref<8x128xf32, #tpu.memory_space<vmem>>, vector<8x128xf32>
    %c0_1 = arith.constant 0 : index
    %c0_2 = arith.constant 0 : index
    %1 = vector.load %arg1[%c0_1, %c0_2] : memref<8x3xi32, #tpu.memory_space<vmem>>, vector<8x3xi32>
    %2 = tpu.iota {dimensions = array<i32: 1>} : vector<8x128xi32>
    %3 = vector.extract_strided_slice %1 {offsets = [0, 0], sizes = [8, 1], strides = [1, 1]} : vector<8x3xi32> to vector<8x1xi32>
    %4 = vector.broadcast %3 : vector<8x1xi32> to vector<8x128xi32>
    %5 = arith.cmpi eq, %2, %4 : vector<8x128xi32>
    %6 = vector.extract_strided_slice %1 {offsets = [0, 1], sizes = [8, 1], strides = [1, 1]} : vector<8x3xi32> to vector<8x1xi32>
    %7 = vector.broadcast %6 : vector<8x1xi32> to vector<8x128xi32>
    %8 = arith.cmpi eq, %2, %7 : vector<8x128xi32>
    %9 = arith.ori %5, %8 : vector<8x128xi1>
    %10 = vector.extract_strided_slice %1 {offsets = [0, 2], sizes = [8, 1], strides = [1, 1]} : vector<8x3xi32> to vector<8x1xi32>
    %11 = vector.broadcast %10 : vector<8x1xi32> to vector<8x128xi32>
    %12 = arith.cmpi eq, %2, %11 : vector<8x128xi32>
    %13 = arith.ori %9, %12 : vector<8x128xi1>
    %14 = arith.extui %13 : vector<8x128xi1> to vector<8x128xi32>
    %15 = arith.sitofp %14 : vector<8x128xi32> to vector<8x128xf32>
    %16 = arith.addf %0, %15 : vector<8x128xf32>
    %c0_3 = arith.constant 0 : index
    %c0_4 = arith.constant 0 : index
    %17 = vector.load %arg3[%c0_3, %c0_4] : memref<8x128xf32, #tpu.memory_space<vmem>>, vector<8x128xf32>
    %c0_5 = arith.constant 0 : index
    %c0_6 = arith.constant 0 : index
    %18 = vector.load %arg2[%c0_5, %c0_6] : memref<384x128xf32, #tpu.memory_space<vmem>>, vector<128x128xf32>
    %cst = arith.constant dense<0.000000e+00> : vector<8x128xf32>
    %19 = tpu.matmul %16, %18, %cst {dimension_numbers = #tpu.dot_dimension_numbers<[1], [0], [0], [1], [0, 0, 1, 1], [], []>} : vector<8x128xf32>, vector<128x128xf32>, vector<8x128xf32> -> vector<8x128xf32>
    %20 = vector.extract_strided_slice %17 {offsets = [0, 0], sizes = [1, 128], strides = [1, 1]} : vector<8x128xf32> to vector<1x128xf32>
    %21 = vector.broadcast %20 : vector<1x128xf32> to vector<8x128xf32>
    %22 = arith.addf %19, %21 : vector<8x128xf32>
    %23 = vector.extract_strided_slice %17 {offsets = [1, 0], sizes = [1, 128], strides = [1, 1]} : vector<8x128xf32> to vector<1x128xf32>
    %24 = vector.extract_strided_slice %17 {offsets = [2, 0], sizes = [1, 128], strides = [1, 1]} : vector<8x128xf32> to vector<1x128xf32>
    %cst_7 = arith.constant dense<0.000000e+00> : vector<128xf32>
    %25 = vector.multi_reduction <add>, %22, %cst_7 [0] : vector<8x128xf32> to vector<128xf32>
    %26 = vector.shape_cast %25 : vector<128xf32> to vector<1x128xf32>
    %cst_8 = arith.constant 8.000000e+00 : f32
    %27 = vector.broadcast %cst_8 : f32 to vector<1x128xf32>
    %28 = arith.divf %26, %27 : vector<1x128xf32>
    %29 = arith.mulf %22, %22 : vector<8x128xf32>
    %cst_9 = arith.constant dense<0.000000e+00> : vector<128xf32>
    %30 = vector.multi_reduction <add>, %29, %cst_9 [0] : vector<8x128xf32> to vector<128xf32>
    %31 = vector.shape_cast %30 : vector<128xf32> to vector<1x128xf32>
    %cst_10 = arith.constant 8.000000e+00 : f32
    %32 = vector.broadcast %cst_10 : f32 to vector<1x128xf32>
    %33 = arith.divf %31, %32 : vector<1x128xf32>
    %34 = arith.mulf %28, %28 : vector<1x128xf32>
    %35 = arith.subf %33, %34 : vector<1x128xf32>
    %36 = vector.broadcast %28 : vector<1x128xf32> to vector<8x128xf32>
    %37 = arith.subf %22, %36 : vector<8x128xf32>
    %cst_11 = arith.constant 9.99999974E-6 : f32
    %38 = vector.broadcast %cst_11 : f32 to vector<1x128xf32>
    %39 = arith.addf %35, %38 : vector<1x128xf32>
    %40 = math.rsqrt %39 : vector<1x128xf32>
    %41 = vector.broadcast %40 : vector<1x128xf32> to vector<8x128xf32>
    %42 = arith.mulf %37, %41 : vector<8x128xf32>
    %43 = vector.broadcast %23 : vector<1x128xf32> to vector<8x128xf32>
    %44 = arith.mulf %42, %43 : vector<8x128xf32>
    %45 = vector.broadcast %24 : vector<1x128xf32> to vector<8x128xf32>
    %46 = arith.addf %44, %45 : vector<8x128xf32>
    %cst_12 = arith.constant 0.000000e+00 : f32
    %47 = vector.broadcast %cst_12 : f32 to vector<8x128xf32>
    %48 = arith.maximumf %46, %47 : vector<8x128xf32>
    %c128 = arith.constant 128 : index
    %c0_13 = arith.constant 0 : index
    %49 = vector.load %arg2[%c128, %c0_13] : memref<384x128xf32, #tpu.memory_space<vmem>>, vector<128x128xf32>
    %cst_14 = arith.constant dense<0.000000e+00> : vector<8x128xf32>
    %50 = tpu.matmul %48, %49, %cst_14 {dimension_numbers = #tpu.dot_dimension_numbers<[1], [0], [0], [1], [0, 0, 1, 1], [], []>} : vector<8x128xf32>, vector<128x128xf32>, vector<8x128xf32> -> vector<8x128xf32>
    %51 = vector.extract_strided_slice %17 {offsets = [3, 0], sizes = [1, 128], strides = [1, 1]} : vector<8x128xf32> to vector<1x128xf32>
    %52 = vector.broadcast %51 : vector<1x128xf32> to vector<8x128xf32>
    %53 = arith.addf %50, %52 : vector<8x128xf32>
    %54 = vector.extract_strided_slice %17 {offsets = [4, 0], sizes = [1, 128], strides = [1, 1]} : vector<8x128xf32> to vector<1x128xf32>
    %55 = vector.extract_strided_slice %17 {offsets = [5, 0], sizes = [1, 128], strides = [1, 1]} : vector<8x128xf32> to vector<1x128xf32>
    %cst_15 = arith.constant dense<0.000000e+00> : vector<128xf32>
    %56 = vector.multi_reduction <add>, %53, %cst_15 [0] : vector<8x128xf32> to vector<128xf32>
    %57 = vector.shape_cast %56 : vector<128xf32> to vector<1x128xf32>
    %cst_16 = arith.constant 8.000000e+00 : f32
    %58 = vector.broadcast %cst_16 : f32 to vector<1x128xf32>
    %59 = arith.divf %57, %58 : vector<1x128xf32>
    %60 = arith.mulf %53, %53 : vector<8x128xf32>
    %cst_17 = arith.constant dense<0.000000e+00> : vector<128xf32>
    %61 = vector.multi_reduction <add>, %60, %cst_17 [0] : vector<8x128xf32> to vector<128xf32>
    %62 = vector.shape_cast %61 : vector<128xf32> to vector<1x128xf32>
    %cst_18 = arith.constant 8.000000e+00 : f32
    %63 = vector.broadcast %cst_18 : f32 to vector<1x128xf32>
    %64 = arith.divf %62, %63 : vector<1x128xf32>
    %65 = arith.mulf %59, %59 : vector<1x128xf32>
    %66 = arith.subf %64, %65 : vector<1x128xf32>
    %67 = vector.broadcast %59 : vector<1x128xf32> to vector<8x128xf32>
    %68 = arith.subf %53, %67 : vector<8x128xf32>
    %cst_19 = arith.constant 9.99999974E-6 : f32
    %69 = vector.broadcast %cst_19 : f32 to vector<1x128xf32>
    %70 = arith.addf %66, %69 : vector<1x128xf32>
    %71 = math.rsqrt %70 : vector<1x128xf32>
    %72 = vector.broadcast %71 : vector<1x128xf32> to vector<8x128xf32>
    %73 = arith.mulf %68, %72 : vector<8x128xf32>
    %74 = vector.broadcast %54 : vector<1x128xf32> to vector<8x128xf32>
    %75 = arith.mulf %73, %74 : vector<8x128xf32>
    %76 = vector.broadcast %55 : vector<1x128xf32> to vector<8x128xf32>
    %77 = arith.addf %75, %76 : vector<8x128xf32>
    %cst_20 = arith.constant 0.000000e+00 : f32
    %78 = vector.broadcast %cst_20 : f32 to vector<8x128xf32>
    %79 = arith.maximumf %77, %78 : vector<8x128xf32>
    %c256 = arith.constant 256 : index
    %c0_21 = arith.constant 0 : index
    %80 = vector.load %arg2[%c256, %c0_21] : memref<384x128xf32, #tpu.memory_space<vmem>>, vector<128x128xf32>
    %cst_22 = arith.constant dense<0.000000e+00> : vector<8x128xf32>
    %81 = tpu.matmul %79, %80, %cst_22 {dimension_numbers = #tpu.dot_dimension_numbers<[1], [0], [0], [1], [0, 0, 1, 1], [], []>} : vector<8x128xf32>, vector<128x128xf32>, vector<8x128xf32> -> vector<8x128xf32>
    %82 = vector.extract_strided_slice %17 {offsets = [6, 0], sizes = [1, 128], strides = [1, 1]} : vector<8x128xf32> to vector<1x128xf32>
    %83 = vector.broadcast %82 : vector<1x128xf32> to vector<8x128xf32>
    %84 = arith.addf %81, %83 : vector<8x128xf32>
    %c0_23 = arith.constant 0 : index
    %c0_24 = arith.constant 0 : index
    %85 = vector.load %arg4[%c0_23, %c0_24] : memref<8x128xf32, #tpu.memory_space<vmem>>, vector<8x128xf32>
    tpu.vector_store %arg4[%c0_23, %c0_24], %84 {strides = array<i32>} : memref<8x128xf32, #tpu.memory_space<vmem>>, vector<8x128xf32>,
    return
  }
}

</mosaic_0001>

<bundles_post_ra>
// kernel: tpu_custom_call.1
= control target key start
LH: loop header
LB: loop body
LE: loop exit
PB: predicated region body
PF: predicated region fallthrough
CT: control target
= control target key end

     0   :  { %9 = vsyncpa [#allocation3], 0  ;;  %s745_s0 = inlined_call_operand.vmem [shape: f32[8,128], index: 0, kind: input, shape index: {}]   ;;  %s746_s1 = inlined_call_operand.vmem [shape: s32[8,3], index: 1, kind: input, shape index: {}]   ;;  %s747_s2 = inlined_call_operand.hbm [shape: f32[384,128], index: 2, kind: input, shape index: {}]   ;;  %s748_s3 = inlined_call_operand.vmem [shape: f32[8,128], index: 3, kind: input, shape index: {}]   ;;  %s749_s4 = inlined_call_operand.hbm [shape: f32[8,128], index: 4, kind: output, shape index: {}]  }
   0x1   :  { %10 = vsyncpa [#allocation4], 0  ;;  %s623_s15 = smov [#allocation2]  }
   0x2   :  { %s20_s16 = sshll.u32 %s623_s15, 4  ;;  %s21_s16 = int_to_ptr.vmem [resolvable:$true] %s20_s16 }
   0x3   :  { %s587_s17 = scalar_lea.vmem %s21_s16, 6144  ;;  %p592_p1 = scmp.lt.s32.totalorder %s21_s16, %s21_s16 }
   0x4   :  { %p588_p0 = scmp.ne.s32.totalorder %s21_s16, %s587_s17  ;;  %p593_p2 = scmp.lt.s32.totalorder %s587_s17, %s587_s17 }
   0x6   :  { %p594_p3 = por %p593_p2, %p592_p1 }
   0x8   :  { %p595_p4 = pnand %p594_p3, %p588_p0 }
   0xa   :  { %598 = shalt.err (!%p595_p4)
}
   0xb   :  { %s624_s18 = smov 128   ;;  %s625_s19 = smov 8  }
   0xc   :  { %26 = dma.hbm_to_vmem [thread:$0]  %s747_s2, 6144, %s21_s16, [#allocation3], %s624_s18, %s624_s18, %s625_s19  }
   0xd   :  { %619 = dma.done.wait [#allocation3], 6144  }
   0xe   :  { %620 = vsyncadd [#allocation3], 4294961152  ;;  %v626_v0 = vmov 0   ;;  %v627_v1 = vmov 2   ;;  %v628_v2 = vmov 0.0   ;;  %v33_v3 = vld [vmem:[%s746_s1] sm:$0xff]  ;;  %v34_v21 = vlaneseq }
   0xf   :  { %571 = vset.pattern.permute.xlu0 %v626_v0  ;;  %573 = vset.pattern.permute.xlu1 %v627_v1  ;;  %v69_v4 = vld [vmem:[#allocation2 + $0x78] sm:$0xff]  ;;  %v68_v5 = vld [vmem:[#allocation2 + $0x70] sm:$0xff]  ;;  %v67_v6 = vld [vmem:[#allocation2 + $0x68] sm:$0xff]  ;;  %v629_v7 = vmov 1   ;;  %vm630_vm0 = vmmov 0  }
  0x10   :  { %457 = vmatprep.subr.mxu0 %v628_v2  ;;  %492 = vmatprep.subr.mxu1 %v628_v2  ;;  %v66_v8 = vld [vmem:[#allocation2 + $0x60] sm:$0xff]  ;;  %v65_v9 = vld [vmem:[#allocation2 + $0x58] sm:$0xff]  ;;  %v64_v10 = vld [vmem:[#allocation2 + $0x50] sm:$0xff]  ;;  %v35_v23 = vand.u32 127, %v34_v21  ;;  %v706_v45 = vshrl.u32 %v34_v21, 7 }
  0x11   :  { %37 = vperm.xlu0 %571, %v33_v3   ;;  %46 = vperm.xlu1 %573, %v33_v3   ;;  %v63_v11 = vld [vmem:[#allocation2 + $0x48] sm:$0xff]  ;;  %v62_v12 = vld [vmem:[#allocation2 + $0x40] sm:$0xff]  ;;  %v61_v13 = vld [vmem:[#allocation2 + $0x38] sm:$0xff] }
  0x12   :  { %458 = vmatpush3.msra.mxu0 %v69_v4  ;;  %489 = vmatprep.mubr.msk.f32.mxu0 %vm630_vm0, %v628_v2  ;;  %v60_v14 = vld [vmem:[#allocation2 + $0x30] sm:$0xff]  ;;  %v59_v15 = vld [vmem:[#allocation2 + $0x28] sm:$0xff]  ;;  %v58_v16 = vld [vmem:[#allocation2 + $0x20] sm:$0xff]  ;;  %v72_v46 = vsub.s32 0, %v706_v45 }
  0x13   :  { %459 = vmatprep.subr.mxu0 %v628_v2  ;;  %524 = vmatprep.mubr.msk.f32.mxu1 %vm630_vm0, %v628_v2  ;;  %v57_v17 = vld [vmem:[#allocation2 + $0x18] sm:$0xff]  ;;  %v56_v18 = vld [vmem:[#allocation2 + $0x10] sm:$0xff]  ;;  %v55_v19 = vld [vmem:[#allocation2 + $0x8] sm:$0xff] }
  0x14   :  { %460 = vmatpush3.msra.mxu0 %v68_v5  ;;  %v54_v20 = vld [vmem:[#allocation2] sm:$0xff]  ;;  %v192_v29 = vld [vmem:[#allocation2 + $0xf8] sm:$0xff]  ;;  %v191_v30 = vld [vmem:[#allocation2 + $0xf0] sm:$0xff] }
  0x15   :  { %572 = vset.pattern.permute.xlu0 %v629_v7  ;;  %461 = vmatprep.subr.mxu0 %v628_v2  ;;  %v32_v26 = vld [vmem:[%s745_s0] sm:$0xff]  ;;  %v190_v31 = vld [vmem:[#allocation2 + $0xe8] sm:$0xff]  ;;  %v188_v33 = vld [vmem:[#allocation2 + $0xd8] sm:$0xff]  ;;  %v168_v7 = vsub.s32 1, %v706_v45 }
  0x16   :  { %41 = vperm.xlu0 %572, %v33_v3   ;;  %462 = vmatpush3.msra.mxu0 %v67_v6  ;;  %v189_v32 = vld [vmem:[#allocation2 + $0xe0] sm:$0xff]  ;;  %v187_v34 = vld [vmem:[#allocation2 + $0xd0] sm:$0xff]  ;;  %v186_v35 = vld [vmem:[#allocation2 + $0xc8] sm:$0xff] }
  0x17   :  { %463 = vmatprep.subr.mxu0 %v628_v2  ;;  %493 = vmatpush3.msra.mxu1 %v192_v29  ;;  %v185_v36 = vld [vmem:[#allocation2 + $0xc0] sm:$0xff]  ;;  %v184_v37 = vld [vmem:[#allocation2 + $0xb8] sm:$0xff]  ;;  %v183_v38 = vld [vmem:[#allocation2 + $0xb0] sm:$0xff] }
  0x18   :  { %464 = vmatpush3.msra.mxu0 %v66_v8  ;;  %494 = vmatprep.subr.mxu1 %v628_v2  ;;  %v182_v39 = vld [vmem:[#allocation2 + $0xa8] sm:$0xff]  ;;  %v181_v40 = vld [vmem:[#allocation2 + $0xa0] sm:$0xff]  ;;  %v180_v41 = vld [vmem:[#allocation2 + $0x98] sm:$0xff]  ;;  %v173_v8 = vsub.s32 2, %v706_v45 }
  0x19   :  { %465 = vmatprep.subr.mxu0 %v628_v2  ;;  %495 = vmatpush3.msra.mxu1 %v191_v30  ;;  %v179_v42 = vld [vmem:[#allocation2 + $0x90] sm:$0xff]  ;;  %v178_v43 = vld [vmem:[#allocation2 + $0x88] sm:$0xff]  ;;  %v177_v44 = vld [vmem:[#allocation2 + $0x80] sm:$0xff] }
  0x1a   :  { %466 = vmatpush3.msra.mxu0 %v65_v9  ;;  %574 = vset.pattern.permute.xlu0 %v627_v1  ;;  %v712_v47 = vld [vmem:[%s748_s3] sm:$0xff]  ;;  %v310_v21 = vld [vmem:[#allocation2 + $0x158] sm:$0xff]  ;;  %v301_v30 = vld [vmem:[#allocation2 + $0x110] sm:$0xff]  ;;  %s631_s3 = smov [#allocation5]  }
  0x1b   :  { %467 = vmatprep.subr.mxu0 %v628_v2  ;;  %496 = vmatprep.subr.mxu1 %v628_v2  ;;  %v73_v48 = vrot.slane %v712_v47, %v72_v46  ;;  %v302_v29 = vld [vmem:[#allocation2 + $0x118] sm:$0xff]  ;;  %s396_s25 = sshll.u32 %s631_s3, 4  ;;  %s397_s25 = int_to_ptr.vmem [resolvable:$true] %s396_s25 }
  0x1c   :  { %468 = vmatpush3.msra.mxu0 %v64_v10  ;;  %497 = vmatpush3.msra.mxu1 %v190_v31  ;;  %v169_v10 = vrot.slane %v712_v47, %v168_v7  ;;  %v300_v31 = vld [vmem:[#allocation2 + $0x108] sm:$0xff]  ;;  %s599_s26 = scalar_lea.vmem %s397_s25, 128  ;;  %p604_p6 = scmp.lt.s32.totalorder %s397_s25, %s397_s25 }
  0x1d   :  { %469 = vmatprep.subr.mxu0 %v628_v2  ;;  %498 = vmatprep.subr.mxu1 %v628_v2  ;;  %p600_p5 = scmp.ne.s32.totalorder %s397_s25, %s599_s26  ;;  %p605_p7 = scmp.lt.s32.totalorder %s599_s26, %s599_s26 }
  0x1e   :  { %470 = vmatpush3.msra.mxu0 %v63_v11  ;;  %499 = vmatpush3.msra.mxu1 %v189_v32  ;;  %v299_v32 = vld [vmem:[#allocation2 + $0x100] sm:$0xff] }
  0x1f   :  { %471 = vmatprep.subr.mxu0 %v628_v2  ;;  %500 = vmatprep.subr.mxu1 %v628_v2  ;;  %p606_p8 = por %p605_p7, %p604_p6 }
  0x20   :  { %472 = vmatpush3.msra.mxu0 %v62_v12  ;;  %501 = vmatpush3.msra.mxu1 %v188_v33  ;;  %v195_v33 = vsub.s32 3, %v706_v45 }
  0x21   :  { %473 = vmatprep.subr.mxu0 %v628_v2  ;;  %502 = vmatprep.subr.mxu1 %v628_v2  ;;  %p607_p9 = pnand %p606_p8, %p600_p5 }
  0x22   :  { %474 = vmatpush3.msra.mxu0 %v61_v13  ;;  %503 = vmatpush3.msra.mxu1 %v187_v34  ;;  %v174_v13 = vrot.slane %v712_v47, %v173_v8  ;;  %v196_v34 = vrot.slane %v712_v47, %v195_v33 }
  0x23   :  { %475 = vmatprep.subr.mxu0 %v628_v2  ;;  %504 = vmatprep.subr.mxu1 %v628_v2 }
  0x24   :  { %476 = vmatpush3.msra.mxu0 %v60_v14  ;;  %505 = vmatpush3.msra.mxu1 %v186_v35 }
  0x25   :  { %477 = vmatprep.subr.mxu0 %v628_v2  ;;  %506 = vmatprep.subr.mxu1 %v628_v2 }
  0x26   :  { %478 = vmatpush3.msra.mxu0 %v59_v15  ;;  %507 = vmatpush3.msra.mxu1 %v185_v36 }
  0x27   :  { %479 = vmatprep.subr.mxu0 %v628_v2  ;;  %508 = vmatprep.subr.mxu1 %v628_v2 }
  0x28   :  { %480 = vmatpush3.msra.mxu0 %v58_v16  ;;  %509 = vmatpush3.msra.mxu1 %v184_v37 }
  0x29   :  { %481 = vmatprep.subr.mxu0 %v628_v2  ;;  %510 = vmatprep.subr.mxu1 %v628_v2 }
  0x2a   :  { %482 = vmatpush3.msra.mxu0 %v57_v17  ;;  %511 = vmatpush3.msra.mxu1 %v183_v38  ;;  %v314_v17 = vld [vmem:[#allocation2 + $0x178] sm:$0xff] }
  0x2b   :  { %483 = vmatprep.subr.mxu0 %v628_v2  ;;  %512 = vmatprep.subr.mxu1 %v628_v2 }
  0x2c   :  { %484 = vmatpush3.msra.mxu0 %v56_v18  ;;  %513 = vmatpush3.msra.mxu1 %v182_v39  ;;  %v313_v18 = vld [vmem:[#allocation2 + $0x170] sm:$0xff] }
  0x2d   :  { %485 = vmatprep.subr.mxu0 %v628_v2  ;;  %514 = vmatprep.subr.mxu1 %v628_v2 }
  0x2e   :  { %486 = vmatpush3.msra.mxu0 %v55_v19  ;;  %515 = vmatpush3.msra.mxu1 %v181_v40  ;;  %v312_v19 = vld [vmem:[#allocation2 + $0x168] sm:$0xff] }
  0x2f   :  { %487 = vmatprep.subr.mxu0 %v628_v2  ;;  %516 = vmatprep.subr.mxu1 %v628_v2 }
  0x30   :  { %488 = vmatpush3.msra.mxu0 %v54_v20  ;;  %517 = vmatpush3.msra.mxu1 %v180_v41  ;;  %v311_v20 = vld [vmem:[#allocation2 + $0x160] sm:$0xff] }
  0x31   :  { %527 = vmatprep.subr.mxu0 %v628_v2  ;;  %518 = vmatprep.subr.mxu1 %v628_v2 }
  0x32   :  { %519 = vmatpush3.msra.mxu1 %v179_v42 }
  0x33   :  { %520 = vmatprep.subr.mxu1 %v628_v2 }
  0x34   :  { %521 = vmatpush3.msra.mxu1 %v178_v43 }
  0x35   :  { %522 = vmatprep.subr.mxu1 %v628_v2 }
  0x36   :  { %523 = vmatpush3.msra.mxu1 %v177_v44 }
  0x8c   :  { %v38_v22 = vpop.permute.xlu0 %37  ;;  %v47_v24 = vpop.permute.xlu1 %46 }
  0x8d   :  { %vm48_vm1 = vcmp.eq.s32.totalorder %v35_v23, %v47_v24  ;;  %vm39_vm2 = vcmp.eq.s32.totalorder %v35_v23, %v38_v22  ;;  %v309_v22 = vld [vmem:[#allocation2 + $0x150] sm:$0xff]  ;;  %v307_v24 = vld [vmem:[#allocation2 + $0x140] sm:$0xff] }
  0x91   :  { %v42_v25 = vpop.permute.xlu0 %41 }
  0x92   :  { %vm43_vm3 = vcmp.eq.s32.totalorder %v35_v23, %v42_v25  ;;  %v308_v23 = vld [vmem:[#allocation2 + $0x148] sm:$0xff]  ;;  %v306_v25 = vld [vmem:[#allocation2 + $0x138] sm:$0xff] }
  0x93   :  { %vm44_vm4 = vmor %vm39_vm2, %vm43_vm3 }
  0x94   :  { %vm49_vm5 = vmor %vm44_vm4, %vm48_vm1 }
  0x95   :  { %v405_v27 = vsel %vm49_vm5, 1.0, %v628_v2 }
  0x96   :  { %v52_v28 = vadd.f32 %v405_v27, %v32_v26  ;;  %v305_v26 = vld [vmem:[#allocation2 + $0x130] sm:$0xff]  ;;  %v304_v27 = vld [vmem:[#allocation2 + $0x128] sm:$0xff] }
  0x98   :  { %490 = vmatmul.mubr.f32.vlgmr.msra.gmra.mxu0 %v52_v28  ;;  %v303_v28 = vld [vmem:[#allocation2 + $0x120] sm:$0xff] }
  0x99   :  { %559 = vmatprep.mubr.msk.f32.mxu0 %vm630_vm0, %v628_v2  ;;  %528 = vmatpush3.msra.mxu0 %v314_v17 }
  0x9a   :  { %529 = vmatprep.subr.mxu0 %v628_v2 }
  0x9b   :  { %530 = vmatpush3.msra.mxu0 %v313_v18 }
  0x9c   :  { %531 = vmatprep.subr.mxu0 %v628_v2 }
  0x9d   :  { %532 = vmatpush3.msra.mxu0 %v312_v19 }
  0x9e   :  { %533 = vmatprep.subr.mxu0 %v628_v2 }
  0x9f   :  { %534 = vmatpush3.msra.mxu0 %v311_v20 }
  0xa0   :  { %535 = vmatprep.subr.mxu0 %v628_v2 }
  0xa1   :  { %536 = vmatpush3.msra.mxu0 %v310_v21 }
  0xa2   :  { %537 = vmatprep.subr.mxu0 %v628_v2 }
  0xa3   :  { %538 = vmatpush3.msra.mxu0 %v309_v22 }
  0xa4   :  { %539 = vmatprep.subr.mxu0 %v628_v2 }
  0xa5   :  { %540 = vmatpush3.msra.mxu0 %v308_v23 }
  0xa6   :  { %541 = vmatprep.subr.mxu0 %v628_v2 }
  0xa7   :  { %542 = vmatpush3.msra.mxu0 %v307_v24 }
  0xa8   :  { %543 = vmatprep.subr.mxu0 %v628_v2 }
  0xa9   :  { %544 = vmatpush3.msra.mxu0 %v306_v25 }
  0xaa   :  { %545 = vmatprep.subr.mxu0 %v628_v2 }
  0xab   :  { %546 = vmatpush3.msra.mxu0 %v305_v26 }
  0xac   :  { %547 = vmatprep.subr.mxu0 %v628_v2 }
  0xad   :  { %548 = vmatpush3.msra.mxu0 %v304_v27 }
  0xae   :  { %549 = vmatprep.subr.mxu0 %v628_v2 }
  0xaf   :  { %550 = vmatpush3.msra.mxu0 %v303_v28 }
  0xb0   :  { %551 = vmatprep.subr.mxu0 %v628_v2 }
  0xb1   :  { %552 = vmatpush3.msra.mxu0 %v302_v29 }
  0xb2   :  { %553 = vmatprep.subr.mxu0 %v628_v2 }
  0xb3   :  { %554 = vmatpush3.msra.mxu0 %v301_v30 }
  0xb4   :  { %555 = vmatprep.subr.mxu0 %v628_v2 }
  0xb5   :  { %556 = vmatpush3.msra.mxu0 %v300_v31 }
  0xb6   :  { %557 = vmatprep.subr.mxu0 %v628_v2 }
  0xb7   :  { %558 = vmatpush3.msra.mxu0 %v299_v32 }
 0x158   :  { %v140_v49 = vpop.f32.mrf.mxu0 }
 0x159   :  { %v141_v50 = vadd.f32 %v140_v49, %v73_v48 }
 0x15a   :  { %v491_v51 = vpop.f32.mrf.mxu0 }
 0x15b   :  { %v144_v52 = vrot.slane %v141_v50, 4  ;;  %v152_v53 = vmul.f32 %v141_v50, %v141_v50 }
 0x15d   :  { %v145_v54 = vadd.f32 %v144_v52, %v141_v50  ;;  %v153_v55 = vrot.slane %v152_v53, 4 }
 0x15f   :  { %v146_v56 = vrot.slane %v145_v54, 2  ;;  %v154_v57 = vadd.f32 %v153_v55, %v152_v53 }
 0x161   :  { %v147_v58 = vadd.f32 %v146_v56, %v145_v54  ;;  %v155_v59 = vrot.slane %v154_v57, 2 }
 0x163   :  { %v148_v60 = vrot.slane %v147_v58, 1  ;;  %v156_v61 = vadd.f32 %v155_v59, %v154_v57  ;;  %v290_v57 = vsub.s32 4, %v706_v45 }
 0x165   :  { %v149_v62 = vadd.f32 %v148_v60, %v147_v58  ;;  %v157_v63 = vrot.slane %v156_v61, 1  ;;  %v295_v58 = vsub.s32 5, %v706_v45  ;;  %v291_v60 = vrot.slane %v712_v47, %v290_v57 }
 0x167   :  { %v151_v0 = vmul.f32 0.125, %v149_v62  ;;  %v158_v1 = vadd.f32 %v157_v63, %v156_v61  ;;  %v296_v63 = vrot.slane %v712_v47, %v295_v58 }
 0x169   :  { %v159_v3 = vmul.f32 0.125, %v158_v1  ;;  %v160_v4 = vmul.f32 %v151_v0, %v151_v0  ;;  %v162_v9 = vsub.f32 %v141_v50, %v151_v0 }
 0x16b   :  { %v161_v5 = vsub.f32 %v159_v3, %v160_v4  ;;  %v317_v4 = vsub.s32 6, %v706_v45 }
 0x16d   :  { %v163_v6 = vadd.f32 1e-05, %v161_v5  ;;  %v318_v5 = vrot.slane %v712_v47, %v317_v4 }
 0x16f   :  { %575 = vrsqrt.f32 %v163_v6 }
 0x17c   :  { %v576_v11 = vpop.eup %575 }
 0x17d   :  { %v165_v12 = vmul.f32 %v576_v11, %v162_v9 }
 0x17f   :  { %v170_v14 = vmul.f32 %v169_v10, %v165_v12 }
 0x181   :  { %v175_v15 = vadd.f32 %v174_v13, %v170_v14 }
 0x183   :  { %v176_v16 = vmax.f32 %v175_v15, 0.0 }
 0x185   :  { %525 = vmatmul.mubr.f32.vlgmr.msra.gmra.mxu1 %v176_v16 }
 0x245   :  { %v263_v35 = vpop.f32.mrf.mxu1 }
 0x246   :  { %v264_v36 = vadd.f32 %v263_v35, %v196_v34 }
 0x247   :  { %v526_v37 = vpop.f32.mrf.mxu1 }
 0x248   :  { %v267_v38 = vrot.slane %v264_v36, 4  ;;  %v274_v39 = vmul.f32 %v264_v36, %v264_v36 }
 0x24a   :  { %v268_v40 = vadd.f32 %v267_v38, %v264_v36  ;;  %v275_v41 = vrot.slane %v274_v39, 4 }
 0x24c   :  { %v269_v42 = vrot.slane %v268_v40, 2  ;;  %v276_v43 = vadd.f32 %v275_v41, %v274_v39 }
 0x24e   :  { %v270_v44 = vadd.f32 %v269_v42, %v268_v40  ;;  %v277_v46 = vrot.slane %v276_v43, 2 }
 0x250   :  { %v271_v48 = vrot.slane %v270_v44, 1  ;;  %v278_v49 = vadd.f32 %v277_v46, %v276_v43 }
 0x252   :  { %v272_v50 = vadd.f32 %v271_v48, %v270_v44  ;;  %v279_v2 = vrot.slane %v278_v49, 1 }
 0x254   :  { %v273_v51 = vmul.f32 0.125, %v272_v50  ;;  %v280_v52 = vadd.f32 %v279_v2, %v278_v49 }
 0x256   :  { %v281_v53 = vmul.f32 0.125, %v280_v52  ;;  %v282_v54 = vmul.f32 %v273_v51, %v273_v51  ;;  %v284_v59 = vsub.f32 %v264_v36, %v273_v51 }
 0x258   :  { %v283_v55 = vsub.f32 %v281_v53, %v282_v54 }
 0x25a   :  { %v285_v56 = vadd.f32 1e-05, %v283_v55 }
 0x25c   :  { %577 = vrsqrt.f32 %v285_v56 }
 0x269   :  { %v578_v61 = vpop.eup %577 }
 0x26a   :  { %v287_v62 = vmul.f32 %v578_v61, %v284_v59 }
 0x26c   :  { %v292_v0 = vmul.f32 %v291_v60, %v287_v62 }
 0x26e   :  { %v297_v1 = vadd.f32 %v296_v63, %v292_v0 }
 0x270   :  { %v298_v3 = vmax.f32 %v297_v1, 0.0 }
 0x272   :  { %560 = vmatmul.mubr.f32.vlgmr.msra.gmra.mxu0 %v298_v3 }
 0x332   :  { %v385_v6 = vpop.f32.mrf.mxu0 }
 0x333   :  { %v386_v7 = vadd.f32 %v385_v6, %v318_v5 }
 0x334   :  { %v561_v8 = vpop.f32.mrf.mxu0 }
 0x335   :  { %389 = vst [vmem:[#allocation5] sm:$0xff] %v386_v7 }
 0x336   :  { %610 = shalt.err (!%p607_p9)
}
 0x337   :  { %399 = dma.vmem_to_hbm [thread:$0]  %s397_s25, 128, %s749_s4, [#allocation4]  }
 0x338   :  { %621 = dma.done.wait [#allocation4], 128  }
 0x339   :  { %622 = vsyncadd [#allocation4], 4294967168 }
 0x33a   :  { %403 = vsyncpa [#allocation3], 1 }
 0x33b   :  { %404 = vsyncpa [#allocation4], 1 }

</bundles_post_ra>
